<compile_context>
chip_gen: v5e
topology: v5e:2x2
jax: 0.10.0
libtpu: 0.0.40
codegen_flags: <defaults>
</compile_context>

<pallas_src>
import functools

import jax
import jax.numpy as jnp
from jax.experimental import pallas as pl
from jax.experimental.pallas import tpu as pltpu


def _round_up(n, m):
    return ((n + m - 1) // m) * m


def mlp3_kernel(x_ref, w1_ref, b1_ref, w2_ref, b2_ref, w3_ref, b3_ref, o_ref):
    # x_ref: [TB, D] bf16; weights bf16 [in, out]; biases f32 [1, out]; out f32.
    x = x_ref[...]

    # Layer 1: Linear(D -> H) + ReLU   (bf16 inputs, f32 accumulation)
    h1 = jnp.dot(x, w1_ref[...], preferred_element_type=jnp.float32) + b1_ref[...]
    h1 = jnp.maximum(h1, 0.0).astype(jnp.bfloat16)

    # Layer 2: Linear(H -> H) + ReLU
    h2 = jnp.dot(h1, w2_ref[...], preferred_element_type=jnp.float32) + b2_ref[...]
    h2 = jnp.maximum(h2, 0.0).astype(jnp.bfloat16)

    # Layer 3: Linear(H -> C_pad), no activation (logits; lane-dense padded width)
    logits = jnp.dot(h2, w3_ref[...], preferred_element_type=jnp.float32) + b3_ref[...]
    o_ref[...] = logits.astype(o_ref.dtype)


@jax.jit
def three_layer_net_forward(x, params):
    """x: [B, C, H, W] (NCHW, like PyTorch). Returns logits [B, n_classes] (f32)."""
    w1, b1, w2, b2, w3, b3 = params
    B = x.shape[0]
    x_flat = x.reshape(B, -1)                       # torch.flatten(x, 1)
    D = x_flat.shape[1]
    H = w1.shape[1]
    C_out = w3.shape[1]

    # Lane-dense output width (pad n_classes -> multiple of 128).
    C_pad = _round_up(max(C_out, 128), 128)

    # Batch tiling: at least one 8-sublane tile, at most 256 rows per grid step.
    TB = min(256, _round_up(B, 8))
    B_pad = _round_up(B, TB)
    nb = B_pad // TB

    # Boundary casts / padding (all static shapes under jit).
    x_p = jnp.pad(x_flat, ((0, B_pad - B), (0, 0))).astype(jnp.bfloat16)
    w1_b = w1.astype(jnp.bfloat16)
    w2_b = w2.astype(jnp.bfloat16)
    w3_b = jnp.zeros((H, C_pad), jnp.bfloat16).at[:, :C_out].set(w3.astype(jnp.bfloat16))
    b1_f = b1.astype(jnp.float32)
    b2_f = b2.astype(jnp.float32)
    b3_f = jnp.zeros((1, C_pad), jnp.float32).at[:, :C_out].set(b3.astype(jnp.float32))

    flops = 2 * B_pad * (D * H + H * H + H * C_pad)
    bytes_accessed = (
        2 * (x_p.size + w1_b.size + w2_b.size + w3_b.size)          # bf16 inputs
        + 4 * (b1_f.size + b2_f.size + b3_f.size + B_pad * C_pad)   # f32 biases + out
    )

    resident = lambda shape: pl.BlockSpec(shape, lambda i: (0, 0))  # weights/biases stay in VMEM

    out_padded = pl.pallas_call(
        mlp3_kernel,
        out_shape=jax.ShapeDtypeStruct((B_pad, C_pad), jnp.float32),
        grid=(nb,),
        in_specs=[
            pl.BlockSpec((TB, D), lambda i: (i, 0)),   # x: tiled along batch
            resident((D, H)), resident((1, H)),         # layer 1
            resident((H, H)), resident((1, H)),         # layer 2
            resident((H, C_pad)), resident((1, C_pad)), # layer 3 (lane-padded)
        ],
        out_specs=pl.BlockSpec((TB, C_pad), lambda i: (i, 0)),
        compiler_params=pltpu.CompilerParams(
            dimension_semantics=("parallel",),
        ),
        cost_estimate=pl.CostEstimate(
            flops=flops, transcendentals=0, bytes_accessed=bytes_accessed
        ),
    )(x_p, w1_b, b1_f, w2_b, b2_f, w3_b, b3_f)

    return out_padded[:B, :C_out]


def init_params(key, input_dim, hidden_dim, n_classes):
    """Deterministic init mimicking nn.Linear's U(-1/sqrt(fan_in), 1/sqrt(fan_in)).
    Weights are stored as [in, out] (transposed vs. PyTorch's [out, in])."""
    keys = jax.random.split(key, 6)

    def linear(kw, kb, fan_in, fan_out):
        bound = 1.0 / jnp.sqrt(fan_in)
        w = jax.random.uniform(kw, (fan_in, fan_out), jnp.float32, -bound, bound)
        b = jax.random.uniform(kb, (1, fan_out), jnp.float32, -bound, bound)
        return w, b

    w1, b1 = linear(keys[0], keys[1], input_dim, hidden_dim)
    w2, b2 = linear(keys[2], keys[3], hidden_dim, hidden_dim)
    w3, b3 = linear(keys[4], keys[5], hidden_dim, n_classes)
    return (w1, b1, w2, b2, w3, b3)


if __name__ == "__main__":
    # Small shapes consistent with the module's forward:
    # x: [B=2, C=4, H=16, W=16]  ->  input_dim = 4*16*16 = 1024
    B, C, Himg, Wimg = 2, 4, 16, 16
    input_dim = C * Himg * Wimg
    hidden_dim = 32
    n_classes = 10

    key = jax.random.PRNGKey(0)
    kx, kp = jax.random.split(key)
    x = jax.random.normal(kx, (B, C, Himg, Wimg), jnp.float32)
    params = init_params(kp, input_dim, hidden_dim, n_classes)

    logits = three_layer_net_forward(x, params)
    logits = jax.block_until_ready(logits)

    # Sanity check against a pure-JAX f32 reference of the same math
    # (kernel uses bf16 inputs with f32 accumulation -> loosened tolerance).
    w1, b1, w2, b2, w3, b3 = params
    xf = x.reshape(B, -1)
    ref = jnp.maximum(xf @ w1 + b1, 0.0)
    ref = jnp.maximum(ref @ w2 + b2, 0.0)
    ref = ref @ w3 + b3
    assert logits.shape == (B, n_classes)
    assert jnp.allclose(logits, ref, atol=5e-2, rtol=5e-2)

    print("KERNEL_OK")
</pallas_src>

<mosaic_0001>
module attributes {stable_mosaic.version = 11 : i64} {
  func.func @mlp3_kernel(%arg0: i32, %arg1: memref<8x1024xbf16, #tpu.memory_space<vmem>>, %arg2: memref<1024x32xbf16, #tpu.memory_space<vmem>>, %arg3: memref<1x32xf32, #tpu.memory_space<vmem>>, %arg4: memref<32x32xbf16, #tpu.memory_space<vmem>>, %arg5: memref<1x32xf32, #tpu.memory_space<vmem>>, %arg6: memref<32x128xbf16, #tpu.memory_space<vmem>>, %arg7: memref<1x128xf32, #tpu.memory_space<vmem>>, %arg8: memref<8x128xf32, #tpu.memory_space<vmem>>) attributes {dimension_semantics = [#tpu.dimension_semantics<parallel>], iteration_bounds = array<i64: 1>, scalar_prefetch = 0 : i64, scratch_operands = 0 : i64, tpu.core_type = #tpu.core_type<tc>, window_params = [{transform_indices = @transform_0, window_bounds = array<i64: 8, 1024>}, {pipeline_mode = #tpu.pipeline_mode<synchronous>, transform_indices = @transform_1, window_bounds = array<i64: 1024, 32>}, {pipeline_mode = #tpu.pipeline_mode<synchronous>, transform_indices = @transform_2, window_bounds = array<i64: 1, 32>}, {pipeline_mode = #tpu.pipeline_mode<synchronous>, transform_indices = @transform_3, window_bounds = array<i64: 32, 32>}, {pipeline_mode = #tpu.pipeline_mode<synchronous>, transform_indices = @transform_4, window_bounds = array<i64: 1, 32>}, {pipeline_mode = #tpu.pipeline_mode<synchronous>, transform_indices = @transform_5, window_bounds = array<i64: 32, 128>}, {pipeline_mode = #tpu.pipeline_mode<synchronous>, transform_indices = @transform_6, window_bounds = array<i64: 1, 128>}, {transform_indices = @transform_7, window_bounds = array<i64: 8, 128>}]} {
    %c0 = arith.constant 0 : index
    %c0_0 = arith.constant 0 : index
    %0 = vector.load %arg1[%c0, %c0_0] : memref<8x1024xbf16, #tpu.memory_space<vmem>>, vector<8x1024xbf16>
    %c0_1 = arith.constant 0 : index
    %c0_2 = arith.constant 0 : index
    %1 = vector.load %arg2[%c0_1, %c0_2] : memref<1024x32xbf16, #tpu.memory_space<vmem>>, vector<1024x32xbf16>
    %cst = arith.constant dense<0.000000e+00> : vector<8x32xf32>
    %2 = tpu.matmul %0, %1, %cst {dimension_numbers = #tpu.dot_dimension_numbers<[1], [0], [0], [1], [0, 0, 1, 1], [], []>} : vector<8x1024xbf16>, vector<1024x32xbf16>, vector<8x32xf32> -> vector<8x32xf32>
    %c0_3 = arith.constant 0 : index
    %c0_4 = arith.constant 0 : index
    %3 = vector.load %arg3[%c0_3, %c0_4] : memref<1x32xf32, #tpu.memory_space<vmem>>, vector<1x32xf32>
    %4 = vector.broadcast %3 : vector<1x32xf32> to vector<8x32xf32>
    %5 = arith.addf %2, %4 : vector<8x32xf32>
    %cst_5 = arith.constant 0.000000e+00 : f32
    %6 = vector.broadcast %cst_5 : f32 to vector<8x32xf32>
    %7 = arith.maximumf %5, %6 : vector<8x32xf32>
    %8 = arith.truncf %7 : vector<8x32xf32> to vector<8x32xbf16>
    %c0_6 = arith.constant 0 : index
    %c0_7 = arith.constant 0 : index
    %9 = vector.load %arg4[%c0_6, %c0_7] : memref<32x32xbf16, #tpu.memory_space<vmem>>, vector<32x32xbf16>
    %cst_8 = arith.constant dense<0.000000e+00> : vector<8x32xf32>
    %10 = tpu.matmul %8, %9, %cst_8 {dimension_numbers = #tpu.dot_dimension_numbers<[1], [0], [0], [1], [0, 0, 1, 1], [], []>} : vector<8x32xbf16>, vector<32x32xbf16>, vector<8x32xf32> -> vector<8x32xf32>
    %c0_9 = arith.constant 0 : index
    %c0_10 = arith.constant 0 : index
    %11 = vector.load %arg5[%c0_9, %c0_10] : memref<1x32xf32, #tpu.memory_space<vmem>>, vector<1x32xf32>
    %12 = vector.broadcast %11 : vector<1x32xf32> to vector<8x32xf32>
    %13 = arith.addf %10, %12 : vector<8x32xf32>
    %cst_11 = arith.constant 0.000000e+00 : f32
    %14 = vector.broadcast %cst_11 : f32 to vector<8x32xf32>
    %15 = arith.maximumf %13, %14 : vector<8x32xf32>
    %16 = arith.truncf %15 : vector<8x32xf32> to vector<8x32xbf16>
    %c0_12 = arith.constant 0 : index
    %c0_13 = arith.constant 0 : index
    %17 = vector.load %arg6[%c0_12, %c0_13] : memref<32x128xbf16, #tpu.memory_space<vmem>>, vector<32x128xbf16>
    %cst_14 = arith.constant dense<0.000000e+00> : vector<8x128xf32>
    %18 = tpu.matmul %16, %17, %cst_14 {dimension_numbers = #tpu.dot_dimension_numbers<[1], [0], [0], [1], [0, 0, 1, 1], [], []>} : vector<8x32xbf16>, vector<32x128xbf16>, vector<8x128xf32> -> vector<8x128xf32>
    %c0_15 = arith.constant 0 : index
    %c0_16 = arith.constant 0 : index
    %19 = vector.load %arg7[%c0_15, %c0_16] : memref<1x128xf32, #tpu.memory_space<vmem>>, vector<1x128xf32>
    %20 = vector.broadcast %19 : vector<1x128xf32> to vector<8x128xf32>
    %21 = arith.addf %18, %20 : vector<8x128xf32>
    %c0_17 = arith.constant 0 : index
    %c0_18 = arith.constant 0 : index
    %22 = vector.load %arg8[%c0_17, %c0_18] : memref<8x128xf32, #tpu.memory_space<vmem>>, vector<8x128xf32>
    tpu.vector_store %arg8[%c0_17, %c0_18], %21 {strides = array<i32>} : memref<8x128xf32, #tpu.memory_space<vmem>>, vector<8x128xf32>,
    return
  }
  func.func @transform_0(%arg0: i32) -> (i32, i32) {
    %c0_i32 = arith.constant 0 : i32
    %c0_i32_0 = arith.constant 0 : i32
    return %arg0, %c0_i32 : i32, i32
  }
  func.func @transform_1(%arg0: i32) -> (i32, i32) {
    %c0_i32 = arith.constant 0 : i32
    %c0_i32_0 = arith.constant 0 : i32
    %c0_i32_1 = arith.constant 0 : i32
    return %c0_i32, %c0_i32_0 : i32, i32
  }
  func.func @transform_2(%arg0: i32) -> (i32, i32) {
    %c0_i32 = arith.constant 0 : i32
    %c0_i32_0 = arith.constant 0 : i32
    %c0_i32_1 = arith.constant 0 : i32
    return %c0_i32, %c0_i32_0 : i32, i32
  }
  func.func @transform_3(%arg0: i32) -> (i32, i32) {
    %c0_i32 = arith.constant 0 : i32
    %c0_i32_0 = arith.constant 0 : i32
    %c0_i32_1 = arith.constant 0 : i32
    return %c0_i32, %c0_i32_0 : i32, i32
  }
  func.func @transform_4(%arg0: i32) -> (i32, i32) {
    %c0_i32 = arith.constant 0 : i32
    %c0_i32_0 = arith.constant 0 : i32
    %c0_i32_1 = arith.constant 0 : i32
    return %c0_i32, %c0_i32_0 : i32, i32
  }
  func.func @transform_5(%arg0: i32) -> (i32, i32) {
    %c0_i32 = arith.constant 0 : i32
    %c0_i32_0 = arith.constant 0 : i32
    %c0_i32_1 = arith.constant 0 : i32
    return %c0_i32, %c0_i32_0 : i32, i32
  }
  func.func @transform_6(%arg0: i32) -> (i32, i32) {
    %c0_i32 = arith.constant 0 : i32
    %c0_i32_0 = arith.constant 0 : i32
    %c0_i32_1 = arith.constant 0 : i32
    return %c0_i32, %c0_i32_0 : i32, i32
  }
  func.func @transform_7(%arg0: i32) -> (i32, i32) {
    %c0_i32 = arith.constant 0 : i32
    %c0_i32_0 = arith.constant 0 : i32
    return %arg0, %c0_i32 : i32, i32
  }
}

</mosaic_0001>

<bundles_post_ra>
// kernel: three_layer_net_forward.1
= control target key start
LH: loop header
LB: loop body
LE: loop exit
PB: predicated region body
PF: predicated region fallthrough
CT: control target
= control target key end

     0   :  { %vm701_vm0 = vcmask 261120   ;;  %s1374_s1 = inlined_call_operand.vmem [shape: bf16[1024,32], index: 1, kind: input, shape index: {}]   ;;  %s1375_s2 = inlined_call_operand.vmem [shape: f32[1,32], index: 2, kind: input, shape index: {}]   ;;  %s1376_s0 = inlined_call_operand.vmem [shape: bf16[8,1024], index: 0, kind: input, shape index: {}]   ;;  %s1377_s4 = inlined_call_operand.vmem [shape: f32[1,32], index: 4, kind: input, shape index: {}]   ;;  %s1378_s3 = inlined_call_operand.vmem [shape: bf16[32,32], index: 3, kind: input, shape index: {}]   ;;  %s1379_s5 = inlined_call_operand.vmem [shape: bf16[32,128], index: 5, kind: input, shape index: {}]   ;;  %s1380_s6 = inlined_call_operand.vmem [shape: f32[1,128], index: 6, kind: input, shape index: {}]   ;;  %s1381_s7 = inlined_call_operand.vmem [shape: f32[8,128], index: 7, kind: output, shape index: {}]  }
   0x1   :  { %v1042_v0 = vld [vmem:[%s1374_s1 + $0x38] sm:$0xff]  ;;  %v1041_v4 = vld [vmem:[%s1374_s1 + $0x30] sm:$0xff]  ;;  %v1040_v8 = vld [vmem:[%s1374_s1 + $0x28] sm:$0xff] }
   0x2   :  { %v1050_v1 = vld [vmem:[%s1374_s1 + $0x78] sm:$0xff]  ;;  %575 = vmatpush.bf16.msra.mxu0 %v1042_v0  ;;  %v1049_v5 = vld [vmem:[%s1374_s1 + $0x70] sm:$0xff]  ;;  %v1048_v9 = vld [vmem:[%s1374_s1 + $0x68] sm:$0xff] }
   0x3   :  { %v1058_v2 = vld [vmem:[%s1374_s1 + $0xb8] sm:$0xff]  ;;  %588 = vmatpush.bf16.msra.mxu1 %v1050_v1  ;;  %v1057_v6 = vld [vmem:[%s1374_s1 + $0xb0] sm:$0xff]  ;;  %v1056_v10 = vld [vmem:[%s1374_s1 + $0xa8] sm:$0xff] }
   0x4   :  { %v1066_v3 = vld [vmem:[%s1374_s1 + $0xf8] sm:$0xff]  ;;  %601 = vmatpush.bf16.msra.mxu2 %v1058_v2  ;;  %v1065_v7 = vld [vmem:[%s1374_s1 + $0xf0] sm:$0xff]  ;;  %v1064_v11 = vld [vmem:[%s1374_s1 + $0xe8] sm:$0xff] }
   0x5   :  { %614 = vmatpush.bf16.msra.mxu3 %v1066_v3  ;;  %v1039_v12 = vld [vmem:[%s1374_s1 + $0x20] sm:$0xff]  ;;  %v1038_v16 = vld [vmem:[%s1374_s1 + $0x18] sm:$0xff]  ;;  %v1037_v20 = vld [vmem:[%s1374_s1 + $0x10] sm:$0xff] }
   0x6   :  { %576 = vmatpush.bf16.msra.mxu0 %v1041_v4  ;;  %v1047_v13 = vld [vmem:[%s1374_s1 + $0x60] sm:$0xff]  ;;  %v1046_v17 = vld [vmem:[%s1374_s1 + $0x58] sm:$0xff]  ;;  %v1045_v21 = vld [vmem:[%s1374_s1 + $0x50] sm:$0xff] }
   0x7   :  { %589 = vmatpush.bf16.msra.mxu1 %v1049_v5  ;;  %v1055_v14 = vld [vmem:[%s1374_s1 + $0xa0] sm:$0xff]  ;;  %v1054_v18 = vld [vmem:[%s1374_s1 + $0x98] sm:$0xff]  ;;  %v1053_v22 = vld [vmem:[%s1374_s1 + $0x90] sm:$0xff] }
   0x8   :  { %602 = vmatpush.bf16.msra.mxu2 %v1057_v6  ;;  %v1063_v15 = vld [vmem:[%s1374_s1 + $0xe0] sm:$0xff]  ;;  %v1062_v19 = vld [vmem:[%s1374_s1 + $0xd8] sm:$0xff]  ;;  %v1061_v23 = vld [vmem:[%s1374_s1 + $0xd0] sm:$0xff] }
   0x9   :  { %615 = vmatpush.bf16.msra.mxu3 %v1065_v7  ;;  %v1036_v24 = vld [vmem:[%s1374_s1 + $0x8] sm:$0xff]  ;;  %v27_v29 = vld [vmem:[%s1376_s0] sm:$0xff]  ;;  %v1074_v38 = vld [vmem:[%s1374_s1 + $0x138] sm:$0xff] }
   0xa   :  { %577 = vmatpush.bf16.msra.mxu0 %v1040_v8  ;;  %v1044_v25 = vld [vmem:[%s1374_s1 + $0x48] sm:$0xff]  ;;  %v1035_v30 = vld [vmem:[%s1374_s1] sm:$0xff]  ;;  %v167_v33 = vunpack.c.l.b16 %v27_v29  ;;  %v168_v37 = vunpack.c.h.b16 %v27_v29  ;;  %v1082_v39 = vld [vmem:[%s1374_s1 + $0x178] sm:$0xff] }
   0xb   :  { %590 = vmatpush.bf16.msra.mxu1 %v1048_v9  ;;  %v1052_v26 = vld [vmem:[%s1374_s1 + $0x88] sm:$0xff]  ;;  %v1043_v31 = vld [vmem:[%s1374_s1 + $0x40] sm:$0xff]  ;;  %v1090_v40 = vld [vmem:[%s1374_s1 + $0x1b8] sm:$0xff] }
   0xc   :  { %603 = vmatpush.bf16.msra.mxu2 %v1056_v10  ;;  %v1060_v27 = vld [vmem:[%s1374_s1 + $0xc8] sm:$0xff]  ;;  %v1051_v34 = vld [vmem:[%s1374_s1 + $0x80] sm:$0xff]  ;;  %v1098_v41 = vld [vmem:[%s1374_s1 + $0x1f8] sm:$0xff]  ;;  %v175_v43 = vpack.c.b16 %v167_v33, %v167_v33  ;;  %v176_v45 = vpack.c.b16 %v168_v37, %v168_v37 }
   0xd   :  { %616 = vmatpush.bf16.msra.mxu3 %v1064_v11  ;;  %v28_v28 = vld [vmem:[%s1376_s0 + $0x8] sm:$0xff]  ;;  %v1059_v35 = vld [vmem:[%s1374_s1 + $0xc0] sm:$0xff]  ;;  %v1073_v46 = vld [vmem:[%s1374_s1 + $0x130] sm:$0xff] }
   0xe   :  { %578 = vmatpush.bf16.msra.mxu0 %v1039_v12  ;;  %v169_v32 = vunpack.c.l.b16 %v28_v28  ;;  %v170_v36 = vunpack.c.h.b16 %v28_v28  ;;  %v1081_v47 = vld [vmem:[%s1374_s1 + $0x170] sm:$0xff]  ;;  %v1072_v50 = vld [vmem:[%s1374_s1 + $0x128] sm:$0xff]  ;;  %v1071_v54 = vld [vmem:[%s1374_s1 + $0x120] sm:$0xff] }
   0xf   :  { %591 = vmatpush.bf16.msra.mxu1 %v1047_v13  ;;  %v1089_v48 = vld [vmem:[%s1374_s1 + $0x1b0] sm:$0xff]  ;;  %v1080_v51 = vld [vmem:[%s1374_s1 + $0x168] sm:$0xff]  ;;  %v1079_v55 = vld [vmem:[%s1374_s1 + $0x160] sm:$0xff] }
  0x10   :  { %604 = vmatpush.bf16.msra.mxu2 %v1055_v14  ;;  %v177_v42 = vpack.c.b16 %v169_v32, %v169_v32  ;;  %v178_v44 = vpack.c.b16 %v170_v36, %v170_v36  ;;  %v1097_v49 = vld [vmem:[%s1374_s1 + $0x1f0] sm:$0xff]  ;;  %v1088_v52 = vld [vmem:[%s1374_s1 + $0x1a8] sm:$0xff]  ;;  %v1087_v56 = vld [vmem:[%s1374_s1 + $0x1a0] sm:$0xff] }
  0x11   :  { %617 = vmatpush.bf16.msra.mxu3 %v1063_v15  ;;  %v1096_v53 = vld [vmem:[%s1374_s1 + $0x1e8] sm:$0xff]  ;;  %v1095_v57 = vld [vmem:[%s1374_s1 + $0x1e0] sm:$0xff]  ;;  %v1070_v58 = vld [vmem:[%s1374_s1 + $0x118] sm:$0xff] }
  0x12   :  { %579 = vmatpush.bf16.msra.mxu0 %v1038_v16  ;;  %v1078_v59 = vld [vmem:[%s1374_s1 + $0x158] sm:$0xff]  ;;  %v1069_v62 = vld [vmem:[%s1374_s1 + $0x110] sm:$0xff]  ;;  %v1068_v2 = vld [vmem:[%s1374_s1 + $0x108] sm:$0xff] }
  0x13   :  { %592 = vmatpush.bf16.msra.mxu1 %v1046_v17  ;;  %v1086_v60 = vld [vmem:[%s1374_s1 + $0x198] sm:$0xff]  ;;  %v1077_v63 = vld [vmem:[%s1374_s1 + $0x150] sm:$0xff]  ;;  %v1076_v3 = vld [vmem:[%s1374_s1 + $0x148] sm:$0xff] }
  0x14   :  { %605 = vmatpush.bf16.msra.mxu2 %v1054_v18  ;;  %v1094_v61 = vld [vmem:[%s1374_s1 + $0x1d8] sm:$0xff]  ;;  %v1085_v0 = vld [vmem:[%s1374_s1 + $0x190] sm:$0xff]  ;;  %v1084_v5 = vld [vmem:[%s1374_s1 + $0x188] sm:$0xff] }
  0x15   :  { %618 = vmatpush.bf16.msra.mxu3 %v1062_v19  ;;  %v1093_v1 = vld [vmem:[%s1374_s1 + $0x1d0] sm:$0xff]  ;;  %v1092_v6 = vld [vmem:[%s1374_s1 + $0x1c8] sm:$0xff]  ;;  %v30_v7 = vld [vmem:[%s1376_s0 + $0x18] sm:$0xff] }
  0x16   :  { %580 = vmatpush.bf16.msra.mxu0 %v1037_v20  ;;  %v29_v4 = vld [vmem:[%s1376_s0 + $0x10] sm:$0xff]  ;;  %v1067_v10 = vld [vmem:[%s1374_s1 + $0x100] sm:$0xff]  ;;  %v173_v12 = vunpack.c.l.b16 %v30_v7  ;;  %v174_v13 = vunpack.c.h.b16 %v30_v7  ;;  %v1100_v20 = vld [vmem:[%s1378_s3 + $0x8] sm:$0xff] }
  0x17   :  { %593 = vmatpush.bf16.msra.mxu1 %v1045_v21  ;;  %v171_v8 = vunpack.c.l.b16 %v29_v4  ;;  %v172_v9 = vunpack.c.h.b16 %v29_v4  ;;  %v1075_v11 = vld [vmem:[%s1374_s1 + $0x140] sm:$0xff]  ;;  %v1102_v29 = vld [vmem:[%s1379_s5 + $0x8] sm:$0xff] }
  0x18   :  { %606 = vmatpush.bf16.msra.mxu2 %v1053_v22  ;;  %v1083_v14 = vld [vmem:[%s1374_s1 + $0x180] sm:$0xff]  ;;  %v181_v18 = vpack.c.b16 %v173_v12, %v173_v12  ;;  %v182_v19 = vpack.c.b16 %v174_v13, %v174_v13 }
  0x19   :  { %619 = vmatpush.bf16.msra.mxu3 %v1061_v23  ;;  %v1091_v15 = vld [vmem:[%s1374_s1 + $0x1c0] sm:$0xff]  ;;  %v179_v16 = vpack.c.b16 %v171_v8, %v171_v8  ;;  %v180_v17 = vpack.c.b16 %v172_v9, %v172_v9 }
  0x1a   :  { %581 = vmatpush.bf16.msra.mxu0 %v1036_v24  ;;  %v1103_v28 = vld [vmem:[%s1375_s2] ss:$0 sm:$0xff] }
  0x1b   :  { %594 = vmatpush.bf16.msra.mxu1 %v1044_v25  ;;  %v1101_v32 = vld [vmem:[%s1379_s5] sm:$0xff] }
  0x1c   :  { %607 = vmatpush.bf16.msra.mxu2 %v1052_v26  ;;  %v1099_v26 = vld [vmem:[%s1378_s3] sm:$0xff] }
  0x1d   :  { %620 = vmatpush.bf16.msra.mxu3 %v1060_v27 }
  0x1e   :  { %582 = vmatpush.bf16.msra.mxu0 %v1035_v30 }
  0x1f   :  { %595 = vmatpush.bf16.msra.mxu1 %v1043_v31 }
  0x20   :  { %608 = vmatpush.bf16.msra.mxu2 %v1051_v34 }
  0x21   :  { %621 = vmatpush.bf16.msra.mxu3 %v1059_v35  ;;  %583 = vmatmul.bf16.vlgmr.msra.gmra.mxu0 %v175_v43 }
  0x22   :  { %627 = vmatpush.bf16.msrb.mxu0 %v1074_v38  ;;  %596 = vmatmul.bf16.vlgmr.msra.gmra.mxu1 %v176_v45 }
  0x23   :  { %640 = vmatpush.bf16.msrb.mxu1 %v1082_v39  ;;  %609 = vmatmul.bf16.vlgmr.msra.gmra.mxu2 %v177_v42 }
  0x24   :  { %653 = vmatpush.bf16.msrb.mxu2 %v1090_v40  ;;  %622 = vmatmul.bf16.vlgmr.msra.gmra.mxu3 %v178_v44 }
  0x25   :  { %666 = vmatpush.bf16.msrb.mxu3 %v1098_v41 }
  0x26   :  { %628 = vmatpush.bf16.msrb.mxu0 %v1073_v46 }
  0x27   :  { %641 = vmatpush.bf16.msrb.mxu1 %v1081_v47 }
  0x28   :  { %654 = vmatpush.bf16.msrb.mxu2 %v1089_v48 }
  0x29   :  { %667 = vmatpush.bf16.msrb.mxu3 %v1097_v49 }
  0x2a   :  { %629 = vmatpush.bf16.msrb.mxu0 %v1072_v50 }
  0x2b   :  { %642 = vmatpush.bf16.msrb.mxu1 %v1080_v51  ;;  %v1104_v51 = vld [vmem:[%s1377_s4] ss:$0 sm:$0xff] }
  0x2c   :  { %655 = vmatpush.bf16.msrb.mxu2 %v1088_v52 }
  0x2d   :  { %668 = vmatpush.bf16.msrb.mxu3 %v1096_v53 }
  0x2e   :  { %630 = vmatpush.bf16.msrb.mxu0 %v1071_v54 }
  0x2f   :  { %643 = vmatpush.bf16.msrb.mxu1 %v1079_v55 }
  0x30   :  { %656 = vmatpush.bf16.msrb.mxu2 %v1087_v56 }
  0x31   :  { %669 = vmatpush.bf16.msrb.mxu3 %v1095_v57  ;;  %v1105_v57 = vld [vmem:[%s1380_s6] ss:$0 sm:$0xff] }
  0x32   :  { %631 = vmatpush.bf16.msrb.mxu0 %v1070_v58 }
  0x33   :  { %644 = vmatpush.bf16.msrb.mxu1 %v1078_v59 }
  0x34   :  { %657 = vmatpush.bf16.msrb.mxu2 %v1086_v60 }
  0x35   :  { %670 = vmatpush.bf16.msrb.mxu3 %v1094_v61 }
  0x36   :  { %632 = vmatpush.bf16.msrb.mxu0 %v1069_v62 }
  0x37   :  { %645 = vmatpush.bf16.msrb.mxu1 %v1077_v63 }
  0x38   :  { %658 = vmatpush.bf16.msrb.mxu2 %v1085_v0 }
  0x39   :  { %671 = vmatpush.bf16.msrb.mxu3 %v1093_v1 }
  0x3a   :  { %633 = vmatpush.bf16.msrb.mxu0 %v1068_v2 }
  0x3b   :  { %646 = vmatpush.bf16.msrb.mxu1 %v1076_v3 }
  0x3c   :  { %659 = vmatpush.bf16.msrb.mxu2 %v1084_v5 }
  0x3d   :  { %672 = vmatpush.bf16.msrb.mxu3 %v1092_v6 }
  0x3e   :  { %634 = vmatpush.bf16.msrb.mxu0 %v1067_v10 }
  0x3f   :  { %647 = vmatpush.bf16.msrb.mxu1 %v1075_v11 }
  0x40   :  { %660 = vmatpush.bf16.msrb.mxu2 %v1083_v14 }
  0x41   :  { %673 = vmatpush.bf16.msrb.mxu3 %v1091_v15  ;;  %635 = vmatmul.bf16.vlgmr.msrb.gmra.mxu0 %v179_v16 }
  0x42   :  { %648 = vmatmul.bf16.vlgmr.msrb.gmra.mxu1 %v180_v17  ;;  %711 = vmatpush.bf16.msra.mxu0 %v1100_v20 }
  0x43   :  { %661 = vmatmul.bf16.vlgmr.msrb.gmra.mxu2 %v181_v18  ;;  %749 = vmatpush.bf16.msra.mxu1 %v1102_v29 }
  0x44   :  { %674 = vmatmul.bf16.vlgmr.msrb.gmra.mxu3 %v182_v19 }
  0x46   :  { %712 = vmatpush.bf16.msra.mxu0 %v1099_v26 }
  0x47   :  { %750 = vmatpush.bf16.msra.mxu1 %v1101_v32 }
  0x9e   :  { %v584_v21 = vpop.f32.mrf.mxu0 }
  0x9f   :  { %v597_v22 = vpop.f32.mrf.mxu1  ;;  %v585_v33 = vadd.f32 %v1103_v28, %v584_v21 }
  0xa1   :  { %v598_v34 = vadd.f32 %v597_v22, %v585_v33 }
  0xa6   :  { %v610_v23 = vpop.f32.mrf.mxu2  ;;  %v586_v25 = vpop.f32.mrf.mxu0 }
  0xa7   :  { %v623_v24 = vpop.f32.mrf.mxu3  ;;  %v599_v27 = vpop.f32.mrf.mxu1  ;;  %v611_v35 = vadd.f32 %v610_v23, %v598_v34 }
  0xa9   :  { %v624_v36 = vadd.f32 %v623_v24, %v611_v35 }
  0xae   :  { %v612_v30 = vpop.f32.mrf.mxu2 }
  0xaf   :  { %v625_v31 = vpop.f32.mrf.mxu3 }
  0xbe   :  { %v636_v37 = vpop.f32.mrf.mxu0 }
  0xbf   :  { %v649_v38 = vpop.f32.mrf.mxu1  ;;  %v637_v39 = vadd.f32 %v636_v37, %v624_v36 }
  0xc1   :  { %v650_v40 = vadd.f32 %v649_v38, %v637_v39 }
  0xc6   :  { %v662_v41 = vpop.f32.mrf.mxu2  ;;  %v638_v44 = vpop.f32.mrf.mxu0 }
  0xc7   :  { %v675_v42 = vpop.f32.mrf.mxu3  ;;  %v663_v43 = vadd.f32 %v662_v41, %v650_v40  ;;  %v651_v45 = vpop.f32.mrf.mxu1 }
  0xc9   :  { %v676_v46 = vadd.f32 %v675_v42, %v663_v43 }
  0xcb   :  { %v679_v47 = vmax.f32 %v676_v46, 0.0 }
  0xcd   :  { %v680_v48 = vpack.c.bf16 %v679_v47, %v679_v47 }
  0xce   :  { %v664_v49 = vpop.f32.mrf.mxu2 }
  0xcf   :  { %v677_v50 = vpop.f32.mrf.mxu3  ;;  %1025 = vmatmul.msk.bf16.vlgmr.msra.gmra.mxu0 %vm701_vm0, %v680_v48 }
 0x14c   :  { %v714_v52 = vpop.f32.mrf.mxu0 }
 0x14d   :  { %v715_v53 = vadd.f32 %v1104_v51, %v714_v52 }
 0x14f   :  { %v718_v54 = vmax.f32 %v715_v53, 0.0 }
 0x151   :  { %v719_v55 = vpack.c.bf16 %v718_v54, %v718_v54 }
 0x153   :  { %1034 = vmatmul.msk.bf16.vlgmr.msra.gmra.mxu1 %vm701_vm0, %v719_v55 }
 0x154   :  { %v716_v56 = vpop.f32.mrf.mxu0 }
 0x1d0   :  { %v752_v58 = vpop.f32.mrf.mxu1 }
 0x1d1   :  { %v753_v59 = vadd.f32 %v1105_v57, %v752_v58 }
 0x1d3   :  { %756 = vst [vmem:[%s1381_s7] sm:$0xff] %v753_v59 }
 0x1d8   :  { %v754_v60 = vpop.f32.mrf.mxu1 }

</bundles_post_ra>
